<compile_context>
chip_gen: v6e
topology: v6e:2x2x1
jax: 0.10.0
libtpu: 0.0.40
codegen_flags: <defaults>
</compile_context>

<pallas_src>
import functools

import jax
import jax.numpy as jnp
import numpy as np
from jax.experimental import pallas as pl
from jax.experimental.pallas import tpu as pltpu

EPS = 1e-12            # F.normalize default eps
SLOTS = 128            # lane-dense running candidate buffer width (must be >= k + 1)
VSHIFT = 15            # low bits of the packed key hold the column / slot code
LOWMASK = (1 << VSHIFT) - 1
VSCALE = 32700.0       # similarity in [-1, 1] -> 16-bit code (step ~3e-5 << bf16 error)
QMAX = 65535

_DEFAULT_SCOPED_VMEM = 32 * 1024 * 1024
_V7X_PHYS_VMEM = 64 * 1024 * 1024


def _round_up(x, m):
    return (x + m - 1) // m * m


def _pick_tiles(n):
    """Row tile tm (shared by both kernels), gram column tile tn, padded row count."""
    if n <= 8:
        tm = 8                                     # cannot split below one (8, .) tile
    else:
        # >= 2 row tiles so the "parallel" i axis shards across v7x's 2 TensorCores;
        # capped at 1024 rows to bound VMEM (review: tm 1024-2048, tn 256-512).
        tm = min(1024, _round_up((n + 1) // 2, 8))
    npad = _round_up(n, tm)
    tn = 256 if (npad % 256 == 0) else tm          # asymmetric gram tiles when possible
    return tm, tn, npad


def _vmem_est_mlp(tm, fp, h1p, h2p):
    return (2 * tm * fp * 2                        # x tile (bf16, double buffered)
            + 2 * fp * h1p * 2 + 2 * h1p * h2p * 2  # resident weights (double buffered)
            + 2 * h1p * 4 + 2 * h2p * 4             # biases
            + 4 * tm * h2p * 2                      # two bf16 outputs, double buffered
            + 2 * tm * max(h1p, h2p) * 4)           # f32 intermediates headroom


def _vmem_est_gram(tm, tn, h2p):
    return (2 * tm * h2p * 2 + 2 * tn * h2p * 2     # en_i / en_j tiles (bf16)
            + 4 * tm * SLOTS * 4                    # key/col outputs, double buffered
            + 3 * tm * tn * 4)                      # block f32 + int32 key working set


def _compiler_params(dim_sem, vmem_est):
    kwargs = dict(dimension_semantics=dim_sem)
    if vmem_est > _DEFAULT_SCOPED_VMEM - (2 << 20):
        # explicit budget (review item); capped at v7x's 64 MiB physical VMEM.
        kwargs["vmem_limit_bytes"] = min(vmem_est + (4 << 20), _V7X_PHYS_VMEM)
    return pltpu.CompilerParams(**kwargs)


# ----------------------------- kernel 1: MLP + L2 normalize -----------------------------
def mlp_norm_kernel(x_ref, w1t_ref, b1_ref, w2t_ref, b2_ref, emb_ref, en_ref):
    # internal_forward: Linear -> ReLU -> Linear (y = x @ W.T + b, weights pre-transposed).
    # bf16 MXU operands, f32 accumulation; elementwise math stays f32 (no bf16 VPU on v5e).
    h = jnp.dot(x_ref[...], w1t_ref[...], preferred_element_type=jnp.float32)
    h = jnp.maximum(h + b1_ref[...], 0.0)
    e = jnp.dot(h.astype(jnp.bfloat16), w2t_ref[...],
                preferred_element_type=jnp.float32) + b2_ref[...]
    emb_ref[...] = e.astype(jnp.bfloat16)       # bf16 writeback halves kernel-1 HBM traffic
    # F.normalize(e, dim=1): e * rsqrt(max(||e||^2, eps^2)) -> EUP slot.
    ss = jnp.sum(e * e, axis=-1, keepdims=True)
    en_ref[...] = (e * jax.lax.rsqrt(jnp.maximum(ss, EPS * EPS))).astype(jnp.bfloat16)


# -------------------- kernel 2: tiled gram + streaming per-row top-(k+1) --------------------
def gram_topk_kernel(en_i_ref, en_j_ref, key_ref, col_ref, *, n_real, kk):
    j = pl.program_id(1)
    tn = en_j_ref.shape[0]

    @pl.when(j == 0)
    def _():
        # sentinel entries: quantized value -1 (below every real candidate), own slot id
        # in the low bits so the running argmin fills empty slots in order.
        key_ref[...] = (jax.lax.broadcasted_iota(jnp.int32, key_ref.shape, 1)
                        - (1 << VSHIFT))
        col_ref[...] = jnp.zeros(col_ref.shape, jnp.int32)

    # cosine-similarity tile (tm, tn): bf16 operands, f32 accumulation on the MXU.
    block = jax.lax.dot_general(
        en_i_ref[...], en_j_ref[...], (((1,), (1,)), ((), ())),
        preferred_element_type=jnp.float32)

    # (1, tn) column iotas — broadcast in the compares, never materialized at (tm, tn).
    col_local = jax.lax.broadcasted_iota(jnp.int32, (1, tn), 1)
    col_code = (tn - 1) - col_local                 # so max() prefers the smallest column
    valid = (j * tn + col_local) < n_real           # mask padded columns
    # pack (quantized similarity, column) into one sortable int32 key so a single
    # cross-lane max yields both the row maximum and its argmax.
    q = jnp.clip((block + 1.0) * VSCALE + 0.5, 0.0, float(QMAX)).astype(jnp.int32)
    bkey = jnp.where(valid, (q << VSHIFT) | col_code, -1)

    slot = jax.lax.broadcasted_iota(jnp.int32, (1, SLOTS), 1)

    # running per-row candidate buffer, hoisted to registers: one ref load and one ref
    # store per grid step (instead of 3*(k+1) round-trips).
    runk = key_ref[...]
    runc = col_ref[...]

    def pop(carry):
        bkey, runk, runc = carry
        kmax = jnp.max(bkey, axis=-1, keepdims=True)            # fused max + argmax
        bkey = jnp.where(bkey == kmax, -1, bkey)                 # pop it (key is unique)
        cand_q = kmax >> VSHIFT                                  # (tm, 1), -1 if masked
        cand_col = j * tn + ((tn - 1) - (kmax & LOWMASK))        # (tm, 1) global column
        kmin = jnp.min(runk, axis=-1, keepdims=True)             # fused min + argmin
        rmin_q = kmin >> VSHIFT
        rpos = kmin & LOWMASK                                    # slot holding the minimum
        upd = (slot == rpos) & (cand_q > rmin_q)                 # replace-the-minimum slot
        runk = jnp.where(upd, (cand_q << VSHIFT) | slot, runk)
        runc = jnp.where(upd, cand_col, runc)
        return bkey, runk, runc

    carry = (bkey, runk, runc)
    if kk <= 8:                                   # short fixed loop: full unroll
        for _ in range(kk):
            carry = pop(carry)
    else:                                         # large k: bound live ranges
        carry = jax.lax.fori_loop(0, kk, lambda _, c: pop(c), carry, unroll=2)
    _, runk, runc = carry

    key_ref[...] = runk
    col_ref[...] = runc


# ------------------------------------- forward wrapper -------------------------------------
def mlp_learner_forward(features, params, k):
    """Reproduces MLP_learner.forward: returns (edge_index, edge_weight, embeddings)."""
    N, F = features.shape
    w1, b1, w2, b2 = params
    h1, h2 = w1.shape[0], w2.shape[0]
    kk = k + 1
    assert kk <= SLOTS and kk <= N
    # column indices are carried as int32 -> exact for any N < 2**31 (review concern).

    Fp, H1p, H2p = _round_up(F, 128), _round_up(h1, 128), _round_up(h2, 128)
    tm, tn, Np = _pick_tiles(N)

    def pad2(a, r, c, dt):
        return jnp.pad(a.astype(dt), ((0, r - a.shape[0]), (0, c - a.shape[1])))

    xp = pad2(features, Np, Fp, jnp.bfloat16)
    w1tp = pad2(w1.T, Fp, H1p, jnp.bfloat16)
    w2tp = pad2(w2.T, H1p, H2p, jnp.bfloat16)
    b1p = pad2(b1.reshape(1, -1), 1, H1p, jnp.float32)
    b2p = pad2(b2.reshape(1, -1), 1, H2p, jnp.float32)

    # ---- kernel 1: row-tiled MLP + L2 normalize (weights resident in VMEM) ----
    emb_p, en_p = pl.pallas_call(
        mlp_norm_kernel,
        out_shape=(jax.ShapeDtypeStruct((Np, H2p), jnp.bfloat16),
                   jax.ShapeDtypeStruct((Np, H2p), jnp.bfloat16)),
        grid=(Np // tm,),
        in_specs=[
            pl.BlockSpec((tm, Fp), lambda i: (i, 0)),
            pl.BlockSpec((Fp, H1p), lambda i: (0, 0)),   # constant index -> DMA'd once
            pl.BlockSpec((1, H1p), lambda i: (0, 0)),
            pl.BlockSpec((H1p, H2p), lambda i: (0, 0)),
            pl.BlockSpec((1, H2p), lambda i: (0, 0)),
        ],
        out_specs=(pl.BlockSpec((tm, H2p), lambda i: (i, 0)),
                   pl.BlockSpec((tm, H2p), lambda i: (i, 0))),
        compiler_params=_compiler_params(("parallel",),
                                         _vmem_est_mlp(tm, Fp, H1p, H2p)),
    )(xp, w1tp, b1p, w2tp, b2p)

    # ---- kernel 2: 2-D tiled gram + streaming per-row top-(k+1) (N x N never hits HBM) ----
    key_buf, col_buf = pl.pallas_call(
        functools.partial(gram_topk_kernel, n_real=N, kk=kk),
        out_shape=(jax.ShapeDtypeStruct((Np, SLOTS), jnp.int32),
                   jax.ShapeDtypeStruct((Np, SLOTS), jnp.int32)),
        grid=(Np // tm, Np // tn),
        in_specs=[
            pl.BlockSpec((tm, H2p), lambda i, j: (i, 0)),
            pl.BlockSpec((tn, H2p), lambda i, j: (j, 0)),
        ],
        out_specs=(pl.BlockSpec((tm, SLOTS), lambda i, j: (i, 0)),
                   pl.BlockSpec((tm, SLOTS), lambda i, j: (i, 0))),
        compiler_params=_compiler_params(("parallel", "arbitrary"),
                                         _vmem_est_gram(tm, tn, H2p)),
    )(en_p, en_p)

    # ---- knn_fast sparse bookkeeping (plain JAX glue, O(N*k)) ----
    keys, pos = jax.lax.top_k(key_buf[:N], kk)            # sorted desc, like torch.topk
    inds = jnp.take_along_axis(col_buf[:N], pos, axis=1)  # int32 global columns
    # dequantize the packed similarity (step 1/VSCALE ~ 3e-5, far below bf16 operand error)
    vals = (keys >> VSHIFT).astype(jnp.float32) * (1.0 / VSCALE) - 1.0
    rows = jnp.repeat(jnp.arange(N, dtype=jnp.int32), kk)
    cols = inds.reshape(-1)
    values = vals.reshape(-1)
    norm_row = jnp.sum(vals, axis=1)
    norm_col = jnp.zeros((N,), jnp.float32).at[cols].add(values)   # index_add_
    norm = norm_row + norm_col
    # TODO(synk): like the PyTorch reference, norm ** -0.5 can NaN when norm <= 0.
    edge_weight = values * (norm[rows] ** -0.5) * (norm[cols] ** -0.5)
    edge_index = jnp.stack([rows, cols], axis=0)           # int32 (PyTorch returns int64)
    embeddings = emb_p[:N, :h2].astype(jnp.float32)         # bf16-precision values in f32
    return edge_index, edge_weight, embeddings


def init_params(key, isize):
    """nlayers=2 branch: Linear(isize, isize//4) then Linear(isize//4, isize//8)."""
    h1, h2 = isize // 4, isize // 8
    k1, k2, k3, k4 = jax.random.split(key, 4)
    bnd1 = 1.0 / jnp.sqrt(isize)
    bnd2 = 1.0 / jnp.sqrt(h1)
    w1 = jax.random.uniform(k1, (h1, isize), jnp.float32, -bnd1, bnd1)
    b1 = jax.random.uniform(k2, (h1,), jnp.float32, -bnd1, bnd1)
    w2 = jax.random.uniform(k3, (h2, h1), jnp.float32, -bnd2, bnd2)
    b2 = jax.random.uniform(k4, (h2,), jnp.float32, -bnd2, bnd2)
    return (w1, b1, w2, b2)


if __name__ == "__main__":
    # small shapes consistent with the module: N nodes, feature dim isize, nlayers=2, k=3
    N, isize, k = 16, 32, 3
    key = jax.random.PRNGKey(0)
    k_feat, k_param = jax.random.split(key)
    features = jax.random.normal(k_feat, (N, isize), jnp.float32)
    params = init_params(k_param, isize)

    edge_index, edge_weight, embeddings = mlp_learner_forward(features, params, k)
    jax.block_until_ready((edge_index, edge_weight, embeddings))

    assert edge_index.shape == (2, N * (k + 1))
    assert edge_weight.shape == (N * (k + 1),)
    assert embeddings.shape == (N, isize // 8)
    assert np.isfinite(np.asarray(edge_weight)).all()

    # ---- self-checks vs an f32 plain-JAX reference (tolerances cover bf16 operands) ----
    w1, b1, w2, b2 = params
    hp = jax.lax.Precision.HIGHEST
    h_ref = jnp.maximum(jnp.dot(features, w1.T, precision=hp) + b1, 0.0)
    emb_ref = jnp.dot(h_ref, w2.T, precision=hp) + b2
    en_ref = emb_ref / jnp.maximum(jnp.linalg.norm(emb_ref, axis=1, keepdims=True), EPS)
    sim_ref = np.asarray(jnp.dot(en_ref, en_ref.T, precision=hp))

    assert np.allclose(np.asarray(embeddings), np.asarray(emb_ref), atol=0.05), "emb mismatch"
    rows_np = np.asarray(edge_index[0]).reshape(N, k + 1)
    cols_np = np.asarray(edge_index[1]).reshape(N, k + 1)
    assert (rows_np == np.arange(N)[:, None]).all()
    assert all(len(set(c.tolist())) == k + 1 for c in cols_np)      # distinct neighbours
    kth = np.sort(sim_ref, axis=1)[:, -(k + 1)]
    picked = sim_ref[rows_np, cols_np]
    assert (picked >= kth[:, None] - 0.25).all(), "top-k selection mismatch"
    # edge weights match the reference formula evaluated at the kernel's indices
    norm_chk = picked.sum(axis=1).astype(np.float64)
    np.add.at(norm_chk, cols_np.reshape(-1), picked.reshape(-1))
    ew_chk = (picked.reshape(-1) * norm_chk[rows_np.reshape(-1)] ** -0.5
              * norm_chk[cols_np.reshape(-1)] ** -0.5)
    assert np.allclose(np.asarray(edge_weight), ew_chk, atol=0.25), "edge_weight mismatch"

    print("KERNEL_OK")
</pallas_src>

<mosaic_0001>
module attributes {stable_mosaic.version = 11 : i64} {
  func.func @mlp_norm_kernel(%arg0: i32, %arg1: memref<8x128xbf16, #tpu.memory_space<vmem>>, %arg2: memref<128x128xbf16, #tpu.memory_space<vmem>>, %arg3: memref<1x128xf32, #tpu.memory_space<vmem>>, %arg4: memref<128x128xbf16, #tpu.memory_space<vmem>>, %arg5: memref<1x128xf32, #tpu.memory_space<vmem>>, %arg6: memref<8x128xbf16, #tpu.memory_space<vmem>>, %arg7: memref<8x128xbf16, #tpu.memory_space<vmem>>) attributes {dimension_semantics = [#tpu.dimension_semantics<parallel>], iteration_bounds = array<i64: 2>, scalar_prefetch = 0 : i64, scratch_operands = 0 : i64, tpu.core_type = #tpu.core_type<tc>, window_params = [{transform_indices = @transform_0, window_bounds = array<i64: 8, 128>}, {pipeline_mode = #tpu.pipeline_mode<synchronous>, transform_indices = @transform_1, window_bounds = array<i64: 128, 128>}, {pipeline_mode = #tpu.pipeline_mode<synchronous>, transform_indices = @transform_2, window_bounds = array<i64: 1, 128>}, {pipeline_mode = #tpu.pipeline_mode<synchronous>, transform_indices = @transform_3, window_bounds = array<i64: 128, 128>}, {pipeline_mode = #tpu.pipeline_mode<synchronous>, transform_indices = @transform_4, window_bounds = array<i64: 1, 128>}, {transform_indices = @transform_5, window_bounds = array<i64: 8, 128>}, {transform_indices = @transform_6, window_bounds = array<i64: 8, 128>}]} {
    %c0 = arith.constant 0 : index
    %c0_0 = arith.constant 0 : index
    %0 = vector.load %arg1[%c0, %c0_0] : memref<8x128xbf16, #tpu.memory_space<vmem>>, vector<8x128xbf16>
    %c0_1 = arith.constant 0 : index
    %c0_2 = arith.constant 0 : index
    %1 = vector.load %arg2[%c0_1, %c0_2] : memref<128x128xbf16, #tpu.memory_space<vmem>>, vector<128x128xbf16>
    %cst = arith.constant dense<0.000000e+00> : vector<8x128xf32>
    %2 = tpu.matmul %0, %1, %cst {dimension_numbers = #tpu.dot_dimension_numbers<[1], [0], [0], [1], [0, 0, 1, 1], [], []>} : vector<8x128xbf16>, vector<128x128xbf16>, vector<8x128xf32> -> vector<8x128xf32>
    %c0_3 = arith.constant 0 : index
    %c0_4 = arith.constant 0 : index
    %3 = vector.load %arg3[%c0_3, %c0_4] : memref<1x128xf32, #tpu.memory_space<vmem>>, vector<1x128xf32>
    %4 = vector.broadcast %3 : vector<1x128xf32> to vector<8x128xf32>
    %5 = arith.addf %2, %4 : vector<8x128xf32>
    %cst_5 = arith.constant 0.000000e+00 : f32
    %6 = vector.broadcast %cst_5 : f32 to vector<8x128xf32>
    %7 = arith.maximumf %5, %6 : vector<8x128xf32>
    %8 = arith.truncf %7 : vector<8x128xf32> to vector<8x128xbf16>
    %c0_6 = arith.constant 0 : index
    %c0_7 = arith.constant 0 : index
    %9 = vector.load %arg4[%c0_6, %c0_7] : memref<128x128xbf16, #tpu.memory_space<vmem>>, vector<128x128xbf16>
    %cst_8 = arith.constant dense<0.000000e+00> : vector<8x128xf32>
    %10 = tpu.matmul %8, %9, %cst_8 {dimension_numbers = #tpu.dot_dimension_numbers<[1], [0], [0], [1], [0, 0, 1, 1], [], []>} : vector<8x128xbf16>, vector<128x128xbf16>, vector<8x128xf32> -> vector<8x128xf32>
    %c0_9 = arith.constant 0 : index
    %c0_10 = arith.constant 0 : index
    %11 = vector.load %arg5[%c0_9, %c0_10] : memref<1x128xf32, #tpu.memory_space<vmem>>, vector<1x128xf32>
    %12 = vector.broadcast %11 : vector<1x128xf32> to vector<8x128xf32>
    %13 = arith.addf %10, %12 : vector<8x128xf32>
    %14 = arith.truncf %13 : vector<8x128xf32> to vector<8x128xbf16>
    %c0_11 = arith.constant 0 : index
    %c0_12 = arith.constant 0 : index
    %15 = vector.load %arg6[%c0_11, %c0_12] : memref<8x128xbf16, #tpu.memory_space<vmem>>, vector<8x128xbf16>
    tpu.vector_store %arg6[%c0_11, %c0_12], %14 {strides = array<i32>} : memref<8x128xbf16, #tpu.memory_space<vmem>>, vector<8x128xbf16>,
    %16 = arith.mulf %13, %13 : vector<8x128xf32>
    %cst_13 = arith.constant dense<0.000000e+00> : vector<8xf32>
    %17 = vector.multi_reduction <add>, %16, %cst_13 [1] : vector<8x128xf32> to vector<8xf32>
    %18 = vector.shape_cast %17 : vector<8xf32> to vector<8x1xf32>
    %cst_14 = arith.constant 1.000000e-24 : f32
    %19 = vector.broadcast %cst_14 : f32 to vector<8x1xf32>
    %20 = arith.maximumf %18, %19 : vector<8x1xf32>
    %21 = math.rsqrt %20 : vector<8x1xf32>
    %22 = vector.broadcast %21 : vector<8x1xf32> to vector<8x128xf32>
    %23 = arith.mulf %13, %22 : vector<8x128xf32>
    %24 = arith.truncf %23 : vector<8x128xf32> to vector<8x128xbf16>
    %c0_15 = arith.constant 0 : index
    %c0_16 = arith.constant 0 : index
    %25 = vector.load %arg7[%c0_15, %c0_16] : memref<8x128xbf16, #tpu.memory_space<vmem>>, vector<8x128xbf16>
    tpu.vector_store %arg7[%c0_15, %c0_16], %24 {strides = array<i32>} : memref<8x128xbf16, #tpu.memory_space<vmem>>, vector<8x128xbf16>,
    return
  }
  func.func @transform_0(%arg0: i32) -> (i32, i32) {
    %c0_i32 = arith.constant 0 : i32
    %c0_i32_0 = arith.constant 0 : i32
    return %arg0, %c0_i32 : i32, i32
  }
  func.func @transform_1(%arg0: i32) -> (i32, i32) {
    %c0_i32 = arith.constant 0 : i32
    %c0_i32_0 = arith.constant 0 : i32
    %c0_i32_1 = arith.constant 0 : i32
    return %c0_i32, %c0_i32_0 : i32, i32
  }
  func.func @transform_2(%arg0: i32) -> (i32, i32) {
    %c0_i32 = arith.constant 0 : i32
    %c0_i32_0 = arith.constant 0 : i32
    %c0_i32_1 = arith.constant 0 : i32
    return %c0_i32, %c0_i32_0 : i32, i32
  }
  func.func @transform_3(%arg0: i32) -> (i32, i32) {
    %c0_i32 = arith.constant 0 : i32
    %c0_i32_0 = arith.constant 0 : i32
    %c0_i32_1 = arith.constant 0 : i32
    return %c0_i32, %c0_i32_0 : i32, i32
  }
  func.func @transform_4(%arg0: i32) -> (i32, i32) {
    %c0_i32 = arith.constant 0 : i32
    %c0_i32_0 = arith.constant 0 : i32
    %c0_i32_1 = arith.constant 0 : i32
    return %c0_i32, %c0_i32_0 : i32, i32
  }
  func.func @transform_5(%arg0: i32) -> (i32, i32) {
    %c0_i32 = arith.constant 0 : i32
    %c0_i32_0 = arith.constant 0 : i32
    return %arg0, %c0_i32 : i32, i32
  }
  func.func @transform_6(%arg0: i32) -> (i32, i32) {
    %c0_i32 = arith.constant 0 : i32
    %c0_i32_0 = arith.constant 0 : i32
    return %arg0, %c0_i32 : i32, i32
  }
}

</mosaic_0001>

<bundles_post_ra>
// kernel: tpu_custom_call.1
= control target key start
LH: loop header
LB: loop body
LE: loop exit
PB: predicated region body
PF: predicated region fallthrough
CT: control target
= control target key end

     0   :  { %s1307_s0 = inlined_call_operand.hbm [shape: bf16[16,128], index: 0, kind: input, shape index: {}]   ;;  %s1308_s1 = inlined_call_operand.hbm [shape: bf16[128,128], index: 1, kind: input, shape index: {}]   ;;  %s1309_s2 = inlined_call_operand.vmem [shape: f32[1,128], index: 2, kind: input, shape index: {}]   ;;  %s1310_s3 = inlined_call_operand.hbm [shape: bf16[128,128], index: 3, kind: input, shape index: {}]   ;;  %s1311_s4 = inlined_call_operand.vmem [shape: f32[1,128], index: 4, kind: input, shape index: {}]   ;;  %s1312_s5 = inlined_call_operand.hbm [shape: bf16[16,128], index: 5, kind: output, shape index: {0}]   ;;  %s1313_s6 = inlined_call_operand.hbm [shape: bf16[16,128], index: 6, kind: output, shape index: {1}]  }
   0x1   :  { %1318 = sst [smem:[#allocation15_spill]] %s1308_s1 }
   0x2   :  { %12 = vsyncpa [#allocation3], 0 }
   0x3   :  { %14 = vsyncpa [#allocation3 + $0x1], 0 }
   0x4   :  { %15 = vsyncpa [#allocation6], 0 }
   0x5   :  { %16 = vsyncpa [#allocation4], 0 }
   0x6   :  { %18 = vsyncpa [#allocation4 + $0x1], 0 }
   0x7   :  { %19 = vsyncpa [#allocation10], 0 }
   0x8   :  { %21 = vsyncpa [#allocation10 + $0x1], 0  ;;  %s1109_s21 = smov 0   ;;  %s1111_s22 = smov 0  }
   0x9   :  { %s1113_s23 = smov 0   ;;  %s1115_s24 = smov 0  }
   0xa LB: > { %s1130_s25 = sadd.s32 4294967295, %s1063_s24   ;;  %s696_s26 = sadd.s32 4294967294, %s1063_s24   ;;  %s1063_s24 = sphi %s1115_s24, %s1337_s24   ;;  %s1059_s23 = sphi %s1113_s23, %s1336_s23   ;;  %s1055_s22 = sphi %s1111_s22, %s1335_s22   ;;  %s1051_s21 = sphi %s1109_s21, %s1334_s21  }
   0xb   : > { %p47_p0 = scmp.ne.s32.totalorder %s1055_s22, %s1051_s21  ;;  %p1314_p1 = scmp.eq.s32.totalorder %s1130_s25, 0 }
   0xc   : > { %p161_p3 = scmp.eq.s32.totalorder %s696_s26, 1  ;;  %p697_p5 = scmp.ge.s32.totalorder %s1063_s24, 1 }
   0xd   : > { %p1139_p4 = por %p1314_p1, %p47_p0  ;;  %p194_p7 = scmp.lt.s32.totalorder %s1063_s24, 3 }
   0xe   : > { %p1144_p6 = por %p161_p3, %p47_p0  ;;  %s1065_s30 = smov [#allocation5]  }
   0xf   : > { %s1319_s27 = scalar_select %p1139_p4, 1, 0 }
  0x10   : > { %s1320_s28 = scalar_select %p1144_p6, 1, 0 }
  0x11   : > { %p1149_p8 = pnand %p697_p5, %p194_p7  ;;  %s206_s7 = sshll.u32 %s1065_s30, 4  ;;  %s207_s7 = int_to_ptr.vmem [resolvable:$true] %s206_s7 }
  0x12   : > { %s1066_s9 = smov [#allocation7]   ;;  %s896_s11 = scalar_lea.vmem %s207_s7, 1024 }
  0x13   : > { %s1321_s29 = scalar_select %p1149_p8, 1, 0 }
  0x14   : > { %p805_p9 = pneg %p1149_p8  ;;  %s222_s10 = sshll.u32 %s1066_s9, 4  ;;  %s223_s10 = int_to_ptr.vmem [resolvable:$true] %s222_s10 }
  0x15   : > { %p897_p13 = scmp.ne.s32.totalorder %s207_s7, %s896_s11  ;;  %p904_p5 = scmp.lt.s32.totalorder %s207_s7, %s207_s7 }
  0x16   : > { %p1158_p11 = pnand %p805_p9, %p1314_p1  ;;  %p905_p7 = scmp.lt.s32.totalorder %s896_s11, %s896_s11 }
  0x18   : > { %p887_p12 = pneg %p1158_p11  ;;  %p906_p10 = por %p905_p7, %p904_p5 }
  0x1a   : > { %p899_p0 = pnand %p897_p13, %p887_p12 }
  0x1c   : > { %p900_p3 = pneg %p899_p0 }
  0x1e   : > { %p907_p9 = pnand %p906_p10, %p900_p3 }
  0x20   : > { %910 = shalt.err (!%p907_p9)
}
  0x21   : > { %s1067_s12 = smov 64   ;;  %s1068_s13 = smov 4  }
  0x22   : > { %s1323_s1 = sld [smem:[#allocation15_spill]]  ;;  %s922_s16 = scalar_lea.vmem %s223_s10, 1024 }
  0x23   : > { %p923_p1 = scmp.ne.s32.totalorder %s223_s10, %s922_s16  ;;  %p930_p2 = scmp.lt.s32.totalorder %s223_s10, %s223_s10 }
  0x24   : > { %p931_p6 = scmp.lt.s32.totalorder %s922_s16, %s922_s16 }
  0x25   : > { %p925_p13 = pnand %p923_p1, %p887_p12 }
  0x26   : > { %p932_p5 = por %p931_p6, %p930_p2 }
  0x27   : > { %p926_p0 = pneg %p925_p13 }
  0x28   : > { %808 = dma.hbm_to_vmem [thread:$0]  (!%p1158_p11), %s1323_s1, 1024, %s207_s7, [#allocation6], %s1067_s12, %s1067_s12, %s1068_s13  }
  0x29   : > { %p933_p10 = pnand %p932_p5, %p926_p0 }
  0x2b   : > { %936 = shalt.err (!%p933_p10)
}
  0x2c   : > { %811 = dma.hbm_to_vmem [thread:$0]  (!%p1158_p11), %s1310_s3, 1024, %s223_s10, [#allocation6], %s1067_s12, %s1067_s12, %s1068_s13  }
  0x2d   : > { %s1181_s19 = sadd.s32 1, %s1063_s24   ;;  %s34_s20 = sadd.s32 1, %s1059_s23 }
  0x2e   : > { %s31_s26 = ssub.s32 %s1063_s24, %s1181_s19  ;;  %p41_p1 = scmp.ne.s32.totalorder %s1059_s23, %s1055_s22 }
  0x2f   : > { %p32_p2 = scmp.eq.s32.totalorder %s31_s26, 0  ;;  %p42_p6 = scmp.eq.s32.totalorder %s1063_s24, 0 }
  0x30   : > { %p1324_p12 = scmp.eq.s32.totalorder %s1130_s25, 1  ;;  %p825_p7 = scmp.lt.s32.totalorder %s1063_s24, 2 }
  0x31   : > { %s1197_s7 = scalar_select %p32_p2, %s1059_s23, %s34_s20  }
  0x32   : > { %p1191_p3 = por %p1324_p12, %p41_p1  ;;  %p43_p9 = por %p42_p6, %p41_p1 }
  0x33   : > { %s239_s8 = sand.u32 1, %s1059_s23   ;;  %s702_s10 = sshll.u32 %s1063_s24, 6 }
  0x34   : > { %s1325_s30 = scalar_select %p1191_p3, 1, 0 }
  0x35   : > { %s701_s9 = sshll.u32 %s239_s8, 2  ;;  %s1204_s13 = scalar_lea.hbm %s1307_s0, %s702_s10 }
  0x36   : > { %s243_s14 = scalar_lea.vmem [#allocation2], %s701_s9  ;;  %p1206_p11 = pnand %p825_p7, %p43_p9 }
  0x37   : > { %s250_s15 = sshll.u32 %s243_s14, 4  ;;  %s240_s17 = scalar_lea.sflag [#allocation3], %s239_s8  ;;  %s251_s15 = int_to_ptr.vmem [resolvable:$true] %s250_s15 }
  0x38   : > { %s937_s18 = scalar_lea.hbm %s1204_s13, 64  ;;  %p939_p0 = pneg %p1206_p11 }
  0x39   : > { %p938_p13 = scmp.ne.s32.totalorder %s1204_s13, %s937_s18  ;;  %s942_s10 = scalar_lea.hbm %s1307_s0, 128 }
  0x3a   : > { %p943_p1 = scmp.lt.s32.totalorder %s1204_s13, %s1307_s0  ;;  %p944_p2 = scmp.lt.s32.totalorder %s942_s10, %s937_s18 }
  0x3b   : > { %p940_p5 = pnand %p939_p0, %p938_p13 }
  0x3c   : > { %p945_p6 = por %p944_p2, %p943_p1 }
  0x3d   : > { %p941_p10 = pneg %p940_p5 }
  0x3f   : > { %p946_p12 = pnand %p945_p6, %p941_p10 }
  0x41   : > { %949 = shalt.err (!%p946_p12)
}
  0x42   : > { %s950_s12 = scalar_lea.vmem %s251_s15, 64  ;;  %s1069_s8 = smov [#allocation2]  }
  0x43   : > { %p951_p7 = scmp.ne.s32.totalorder %s251_s15, %s950_s12  ;;  %s955_s14 = sshll.u32 %s1069_s8, 4  ;;  %s956_s14 = int_to_ptr.vmem [resolvable:$false] %s955_s14 }
  0x44   : > { %s957_s1 = scalar_lea.vmem %s956_s14, 128  ;;  %p958_p13 = scmp.lt.s32.totalorder %s251_s15, %s956_s14 }
  0x45   : > { %p953_p9 = pnand %p951_p7, %p939_p0  ;;  %p959_p5 = scmp.lt.s32.totalorder %s957_s1, %s950_s12 }
  0x47   : > { %p954_p3 = pneg %p953_p9  ;;  %p960_p4 = por %p959_p5, %p958_p13 }
  0x49   : > { %p961_p8 = pnand %p960_p4, %p954_p3 }
  0x4b   : > { %964 = shalt.err (!%p961_p8)
}
  0x4c   : > { %815 = dma.hbm_to_vmem [thread:$0]  (!%p1206_p11), %s1204_s13, 64, %s251_s15, %s240_s17  }
  0x4d   : > { %p1327_p10 = scmp.ne.s32.totalorder %s1321_s29, 0 }
  0x4e   : > { %s1227_s18 = sand.u32 (!%p1327_p10), 1, %s1055_s22   ;;  %p1328_p4 = scmp.ne.s32.totalorder (!%p1327_p10), %s1319_s27, 0 }
  0x4f   : > { %259 = sbr.rel (%p1327_p10) target bundleno = 689 (0x2b1), region = 40  ;;  %s1230_s20 = sshll.u32 (!%p1327_p10), %s1227_s18, 2 }
  0x50   : > { %s262_s1 = scalar_lea.sflag (!%p1327_p10), [#allocation3], %s1227_s18  ;;  %s265_s26 = scalar_lea.vmem (!%p1327_p10), [#allocation2], %s1230_s20 }
  0x54   : > { %1034 = dma.done.wait (%p1328_p4), %s262_s1, 64  }
  0x55   : > { %1036 = vsyncadd (%p1328_p4), %s262_s1, 4294967232  ;;  %p1329_p8 = scmp.eq.s32.totalorder %s1130_s25, 0 }
  0x57   : > { %1038 = dma.done.wait (%p1329_p8), [#allocation6], 2048   ;;  %p1330_p3 = pmov %p1329_p8 }
  0x58   : > { %v1070_v0 = vmov 0.0   ;;  %vm1071_vm0 = vmmov 0   ;;  %v867_v1 = vld [vmem:[#allocation5 + $0x38] sm:$0xff]   ;;  %v868_v2 = vld [vmem:[#allocation5 + $0x30] sm:$0xff]   ;;  %v869_v3 = vld [vmem:[#allocation5 + $0x28] sm:$0xff]   ;;  %s299_s16 = scalar_lea.vmem [#allocation8], %s1230_s20 }
  0x59   : > { %1040 = vsyncadd (%p1330_p3), [#allocation6], 4294965248  ;;  %751 = vmatprep.subr.bf16.mxu0 %v1070_v0  ;;  %767 = vmatprep.mubr.msk.bf16.mxu0 %vm1071_vm0, %v1070_v0  ;;  %v875_v4 = vld [vmem:[#allocation7 + $0x38] sm:$0xff]   ;;  %v870_v5 = vld [vmem:[#allocation5 + $0x20] sm:$0xff]   ;;  %s729_s17 = sshll.u32 %s1130_s25, 6  ;;  %s562_s12 = sshll.u32 %s299_s16, 4  ;;  %s563_s12 = int_to_ptr.vmem [resolvable:$true] %s562_s12 }
  0x5a   : > { %771 = vmatprep.subr.bf16.mxu1 %v1070_v0  ;;  %787 = vmatprep.mubr.msk.bf16.mxu1 %vm1071_vm0, %v1070_v0  ;;  %v876_v6 = vld [vmem:[#allocation7 + $0x30] sm:$0xff]   ;;  %v871_v7 = vld [vmem:[#allocation5 + $0x18] sm:$0xff]   ;;  %v877_v8 = vld [vmem:[#allocation7 + $0x28] sm:$0xff]   ;;  %s560_s9 = scalar_lea.hbm %s1312_s5, %s729_s17  ;;  %s544_s8 = scalar_lea.sflag [#allocation4], %s1227_s18 }
  0x5b   : > { %752 = vmatpush3.bf16.msra.mxu0 %v867_v1  ;;  %772 = vmatpush3.bf16.msra.mxu1 %v875_v4  ;;  %v872_v9 = vld [vmem:[#allocation5 + $0x10] sm:$0xff]   ;;  %v878_v10 = vld [vmem:[#allocation7 + $0x20] sm:$0xff]   ;;  %v873_v11 = vld [vmem:[#allocation5 + $0x8] sm:$0xff]   ;;  %s965_s14 = scalar_lea.vmem %s563_s12, 64  ;;  %p1331_p0 = scmp.ne.s32.totalorder %s1325_s30, 0 }
  0x5c   : > { %753 = vmatprep.subr.bf16.mxu0 %v1070_v0  ;;  %773 = vmatprep.subr.bf16.mxu1 %v1070_v0  ;;  %v879_v12 = vld [vmem:[#allocation7 + $0x18] sm:$0xff]   ;;  %v874_v13 = vld [vmem:[#allocation5] sm:$0xff]   ;;  %v880_v14 = vld [vmem:[#allocation7 + $0x10] sm:$0xff]   ;;  %p966_p11 = scmp.ne.s32.totalorder %s563_s12, %s965_s14  ;;  %s1072_s1 = smov [#allocation8]  }
  0x5d   : > { %v308_v15 = vld [vmem:[%s265_s26] sm:$0xf]  ;;  %v881_v16 = vld [vmem:[#allocation7 + $0x8] sm:$0xff]   ;;  %v882_v17 = vld [vmem:[#allocation7] sm:$0xff]   ;;  %s969_s26 = sshll.u32 %s1072_s1, 4  ;;  %s970_s26 = int_to_ptr.vmem [resolvable:$false] %s969_s26 }
  0x5e   : > { %v709_v18 = vld [vmem:[%s1309_s2] ss:$0 sm:$0xff]  ;;  %p967_p1 = pnand %p966_p11, %p1331_p0  ;;  %s971_s27 = scalar_lea.vmem %s970_s26, 128 }
  0x5f   : > { %754 = vmatpush3.bf16.msra.mxu0 %v868_v2  ;;  %774 = vmatpush3.bf16.msra.mxu1 %v876_v6  ;;  %v718_v26 = vld [vmem:[%s1311_s4] ss:$0 sm:$0xff]  ;;  %p972_p6 = scmp.lt.s32.totalorder %s563_s12, %s970_s26  ;;  %p973_p12 = scmp.lt.s32.totalorder %s971_s27, %s965_s14 }
  0x60   : > { %755 = vmatprep.subr.bf16.mxu0 %v1070_v0  ;;  %775 = vmatprep.subr.bf16.mxu1 %v1070_v0  ;;  %p968_p2 = pneg %p967_p1 }
  0x61   : > { %p974_p7 = por %p973_p12, %p972_p6 }
  0x63   : > { %756 = vmatpush3.bf16.msra.mxu0 %v869_v3  ;;  %776 = vmatpush3.bf16.msra.mxu1 %v877_v8  ;;  %p975_p9 = pnand %p974_p7, %p968_p2 }
  0x64   : > { %757 = vmatprep.subr.bf16.mxu0 %v1070_v0  ;;  %777 = vmatprep.subr.bf16.mxu1 %v1070_v0 }
  0x67   : > { %758 = vmatpush3.bf16.msra.mxu0 %v870_v5  ;;  %778 = vmatpush3.bf16.msra.mxu1 %v878_v10 }
  0x68   : > { %759 = vmatprep.subr.bf16.mxu0 %v1070_v0  ;;  %779 = vmatprep.subr.bf16.mxu1 %v1070_v0 }
  0x6b   : > { %760 = vmatpush3.bf16.msra.mxu0 %v871_v7  ;;  %780 = vmatpush3.bf16.msra.mxu1 %v879_v12 }
  0x6c   : > { %761 = vmatprep.subr.bf16.mxu0 %v1070_v0  ;;  %781 = vmatprep.subr.bf16.mxu1 %v1070_v0 }
  0x6f   : > { %762 = vmatpush3.bf16.msra.mxu0 %v872_v9  ;;  %782 = vmatpush3.bf16.msra.mxu1 %v880_v14 }
  0x70   : > { %763 = vmatprep.subr.bf16.mxu0 %v1070_v0  ;;  %783 = vmatprep.subr.bf16.mxu1 %v1070_v0 }
  0x73   : > { %764 = vmatpush3.bf16.msra.mxu0 %v873_v11  ;;  %784 = vmatpush3.bf16.msra.mxu1 %v881_v16 }
  0x74   : > { %765 = vmatprep.subr.bf16.mxu0 %v1070_v0  ;;  %785 = vmatprep.subr.bf16.mxu1 %v1070_v0 }
  0x77   : > { %766 = vmatpush3.bf16.msra.mxu0 %v874_v13  ;;  %786 = vmatpush3.bf16.msra.mxu1 %v882_v17 }
  0x7a   : > { %768 = vmatmul.mubr.bf16.vlgmr.msra.gmra.mxu0 %v308_v15 }
 0x13a   : > { %v414_v19 = vpop.f32.mrf.mxu0 }
 0x13b   : > { %v415_v20 = vadd.f32 %v709_v18, %v414_v19 }
 0x13c   : > { %v769_v21 = vpop.f32.mrf.mxu0 }
 0x13d   : > { %v420_v22 = vmax.f32 %v415_v20, 0.0 }
 0x13e   : > { %v417_v23 = vpop.f32.mrf.mxu0 }
 0x13f   : > { %v421_v24 = vpack.c.bf16 %v420_v22, %v420_v22 }
 0x140   : > { %v770_v25 = vpop.f32.mrf.mxu0 }
 0x141   : > { %788 = vmatmul.mubr.bf16.vlgmr.msra.gmra.mxu1 %v421_v24 }
 0x201   : > { %v527_v27 = vpop.f32.mrf.mxu1 }
 0x202   : > { %v528_v28 = vadd.f32 %v718_v26, %v527_v27 }
 0x203   : > { %v789_v29 = vpop.f32.mrf.mxu1 }
 0x204   : > { %v533_v30 = vpack.c.bf16 %v528_v28, %v528_v28  ;;  %v535_v31 = vmul.f32 %v528_v28, %v528_v28 }
 0x205   : > { %v530_v32 = vpop.f32.mrf.mxu1 }
 0x206   : > { %536 = vadd.xlane.f32.xlu0 %v535_v31  ;;  %534 = vst [vmem:[%s299_s16] sm:$0xf] %v533_v30 }
 0x207   : > { %v790_v33 = vpop.f32.mrf.mxu1 }
 0x208   : > { %978 = shalt.err (!%p975_p9)
}
 0x209   : > { %s979_s29 = scalar_lea.hbm %s560_s9, 64  ;;  %s983_s16 = scalar_lea.hbm %s1312_s5, 128 }
 0x20a   : > { %p980_p13 = scmp.ne.s32.totalorder %s560_s9, %s979_s29  ;;  %p984_p4 = scmp.lt.s32.totalorder %s560_s9, %s1312_s5 }
 0x20b   : > { %p985_p8 = scmp.lt.s32.totalorder %s983_s16, %s979_s29 }
 0x20c   : > { %p981_p5 = pnand %p980_p13, %p1331_p0 }
 0x20d   : > { %p986_p3 = por %p985_p8, %p984_p4 }
 0x20e   : > { %p982_p10 = pneg %p981_p5 }
 0x210   : > { %p987_p11 = pnand %p986_p3, %p982_p10 }
 0x212   : > { %990 = shalt.err (!%p987_p11)
}
 0x213   : > { %801 = dma.vmem_to_hbm [thread:$0]  (%p1331_p0), %s563_s12, 64, %s560_s9, %s544_s8  }
 0x214   : > { %s306_s14 = scalar_lea.vmem [#allocation9], %s1230_s20  ;;  %s573_s29 = scalar_lea.hbm %s1313_s6, %s729_s17 }
 0x215   : > { %s575_s1 = sshll.u32 %s306_s14, 4  ;;  %s549_s13 = scalar_lea.sflag [#allocation10], %s1227_s18  ;;  %s576_s1 = int_to_ptr.vmem [resolvable:$true] %s575_s1 }
 0x216   : > { %s991_s15 = scalar_lea.vmem %s576_s1, 64  ;;  %s1073_s9 = smov [#allocation9]  }
 0x217   : > { %p992_p1 = scmp.ne.s32.totalorder %s576_s1, %s991_s15  ;;  %s995_s12 = sshll.u32 %s1073_s9, 4  ;;  %s996_s12 = int_to_ptr.vmem [resolvable:$false] %s995_s12 }
 0x218   : > { %s997_s20 = scalar_lea.vmem %s996_s12, 128  ;;  %p998_p12 = scmp.lt.s32.totalorder %s576_s1, %s996_s12 }
 0x219   : > { %p993_p2 = pnand %p992_p1, %p1331_p0  ;;  %p999_p7 = scmp.lt.s32.totalorder %s997_s20, %s991_s15 }
 0x21b   : > { %p994_p6 = pneg %p993_p2  ;;  %p1000_p9 = por %p999_p7, %p998_p12 }
 0x21d   : > { %p1001_p13 = pnand %p1000_p9, %p994_p6 }
 0x28f   : > { %v537_v34 = vpop.xlane.xlu0 %536 }
 0x290   : > { %v538_v35 = vmax.f32 %v537_v34, 1e-24 }
 0x292   : > { %883 = vrsqrt.f32 %v538_v35 }
 0x29f   : > { %v884_v36 = vpop.eup %883 }
 0x2a0   : > { %v540_v37 = vmul.f32 %v884_v36, %v528_v28 }
 0x2a2   : > { %v541_v38 = vpack.c.bf16 %v540_v37, %v540_v37 }
 0x2a4   : > { %542 = vst [vmem:[%s306_s14] sm:$0xf] %v541_v38 }
 0x2a5   : > { %1004 = shalt.err (!%p1001_p13)
}
 0x2a6   : > { %s1005_s25 = scalar_lea.hbm %s573_s29, 64  ;;  %s1009_s8 = scalar_lea.hbm %s1313_s6, 128 }
 0x2a7   : > { %p1006_p5 = scmp.ne.s32.totalorder %s573_s29, %s1005_s25  ;;  %p1010_p8 = scmp.lt.s32.totalorder %s573_s29, %s1313_s6 }
 0x2a8   : > { %p1011_p3 = scmp.lt.s32.totalorder %s1009_s8, %s1005_s25 }
 0x2a9   : > { %p1007_p10 = pnand %p1006_p5, %p1331_p0 }
 0x2aa   : > { %p1012_p11 = por %p1011_p3, %p1010_p8 }
 0x2ab   : > { %p1008_p4 = pneg %p1007_p10 }
 0x2ad   : > { %p1013_p1 = pnand %p1012_p11, %p1008_p4 }
 0x2af   : > { %1016 = shalt.err (!%p1013_p1)
}
 0x2b0   : > { %802 = dma.vmem_to_hbm [thread:$0]  (%p1331_p0), %s576_s1, 64, %s573_s29, %s549_s13  }
 0x2b1 PF: > { %s587_s11 = sand.u32 1, %s1051_s21   ;;  %p1332_p2 = scmp.ne.s32.totalorder %s1320_s28, 0 }
 0x2b2   : > { %p1333_p6 = scmp.ge.s32.totalorder %s1063_s24, 2  ;;  %s588_s14 = scalar_lea.sflag [#allocation4], %s587_s11 }
 0x2b4   : > { %p817_p12 = pnand %p1333_p6, %p1332_p2 }
 0x2b6   : > { %p818_p7 = pneg %p817_p12 }
 0x2b8   : > { %1042 = dma.done.wait (%p818_p7), %s588_s14, 64  }
 0x2b9   : > { %1044 = vsyncadd (%p818_p7), %s588_s14, 4294967232  ;;  %s597_s26 = scalar_lea.sflag [#allocation10], %s587_s11 }
 0x2ba   : > { %1046 = dma.done.wait (%p818_p7), %s597_s26, 64  }
 0x2bb   : > { %1048 = vsyncadd (%p818_p7), %s597_s26, 4294967232  ;;  %p24_p0 = scmp.ge.s32.totalorder %s1181_s19, 4   ;;  %s1334_s21 = smov %s1055_s22 }
 0x2bc   : > { %s1335_s22 = smov %s1059_s23  ;;  %s1336_s23 = smov %s1197_s7 }
 0x2bd   : > { %s1337_s24 = smov %s1181_s19  ;;  %26 = sbr.rel (!%p24_p0) target bundleno = 10 (0xa), region = 110 }
 0x2c2   :  { %602 = vsyncpa [#allocation3], 1 }
 0x2c3   :  { %604 = vsyncpa [#allocation3 + $0x1], 1 }
 0x2c4   :  { %605 = vsyncpa [#allocation6], 1 }
 0x2c5   :  { %606 = vsyncpa [#allocation4], 1 }
 0x2c6   :  { %608 = vsyncpa [#allocation4 + $0x1], 1 }
 0x2c7   :  { %609 = vsyncpa [#allocation10], 1 }
 0x2c8   :  { %611 = vsyncpa [#allocation10 + $0x1], 1 }

</bundles_post_ra>
